<compile_context>
chip_gen: v5e
topology: v5e:2x2
jax: 0.10.0
libtpu: 0.0.40
codegen_flags: <defaults>
</compile_context>

<pallas_src>
import functools

import jax
import jax.numpy as jnp
from jax.experimental import pallas as pl
from jax.experimental.pallas import tpu as pltpu


_LANE = 128
_SUBLANE = 8


def _round_up(n: int, m: int) -> int:
    return ((n + m - 1) // m) * m


def _mlp_fused_kernel(*refs, n_layers: int):
    """refs = (x_ref, W1_ref, b1_ref, ..., Wn_ref, bn_ref, o_ref).

    Entire MLP in one invocation: activations stay in vregs/VMEM between
    layers; the only HBM write is the final lane-padded output slab.
    """
    x_ref = refs[0]
    o_ref = refs[1 + 2 * n_layers]

    h = x_ref[...]  # bf16, lane-padded
    for li in range(n_layers):
        w = refs[1 + 2 * li][...]   # bf16 (in_p, out_p)
        b = refs[2 + 2 * li][...]   # f32  (1, out_p)
        # bf16 MXU matmul with f32 accumulation; bias + ReLU in f32 on VPU.
        y = jnp.dot(h.astype(w.dtype), w, preferred_element_type=jnp.float32)
        y = y + b
        if li < n_layers - 1:
            y = jnp.maximum(y, 0.0)
        h = y
    # Lane-dense store of the full padded slab (no masked vst, no in-kernel
    # slice); the wrapper slices off the padding.
    o_ref[...] = h.astype(o_ref.dtype)


def _prepare_params(params, in_features: int, compute_dtype):
    """Pad every feature dim up to a multiple of 128 and cast weights to
    compute_dtype (bf16). Done once, outside the per-call hot path."""
    in_p = _round_up(in_features, _LANE)
    padded = []
    prev = in_p
    for W, b in params:
        w_in, w_out = W.shape
        out_p = _round_up(w_out, _LANE)
        Wp = (jnp.zeros((prev, out_p), compute_dtype)
              .at[:w_in, :w_out].set(W.astype(compute_dtype)))
        bp = (jnp.zeros((1, out_p), jnp.float32)
              .at[0, :w_out].set(b.reshape(-1).astype(jnp.float32)))
        padded.append((Wp, bp))
        prev = out_p
    return padded, in_p, prev


def make_mlp_forward(params, in_features: int, *, batch_block: int = 256,
                     compute_dtype=jnp.bfloat16, out_dtype=jnp.float32):
    """Build a jitted fused-MLP forward. params = [(W_i, b_i)], W_i: (in, out)."""
    n_layers = len(params)
    out_f = params[-1][0].shape[1]

    padded, in_p, out_p = _prepare_params(params, in_features, compute_dtype)
    flat_w = []
    for Wp, bp in padded:
        flat_w += [Wp, bp]

    weight_bytes = sum(int(a.size) * a.dtype.itemsize for a in flat_w)
    max_w = max([in_p] + [w.shape[1] for w, _ in padded])
    x_item = jnp.dtype(compute_dtype).itemsize
    o_item = jnp.dtype(out_dtype).itemsize

    kernel = functools.partial(_mlp_fused_kernel, n_layers=n_layers)

    def _vmem_limit(rows: int, x_bufs: int, out_bufs: int) -> int:
        est = (weight_bytes                      # single-buffered weights/bias
               + x_bufs * rows * in_p * x_item   # x tiles
               + out_bufs * rows * out_p * o_item  # output tiles
               + 3 * rows * max_w * 4)           # live f32 intermediates
        return int(min(max(2 * est, 32 << 20), 64 << 20))

    # TODO(synk): for hidden widths whose resident bf16 weights exceed the v7x
    # 64 MiB VMEM budget, keep weights in HBM (memory_space=pl.ANY) and stream
    # per-layer K/N weight tiles with pltpu.emit_pipeline instead of
    # whole-weight residency.

    @jax.jit
    def forward(x):
        B = x.shape[0]
        xc = x.astype(compute_dtype)
        if B > batch_block:
            # Pipelined path: pad batch to a multiple of batch_block so the
            # tiled path is always taken (nb >= 2; even nb balances v7x's
            # two TensorCores via dimension_semantics=("parallel",)).
            b_pad = _round_up(B, batch_block)
        else:
            b_pad = _round_up(max(B, _SUBLANE), _SUBLANE)
        xp = jnp.pad(xc, ((0, b_pad - B), (0, in_p - in_features)))
        out_shape = jax.ShapeDtypeStruct((b_pad, out_p), out_dtype)

        if b_pad > batch_block:
            nb = b_pad // batch_block
            in_specs = [pl.BlockSpec((batch_block, in_p), lambda i: (i, 0))]
            for Wp, bp in padded:
                # Block index never changes across the grid -> single buffer.
                in_specs.append(pl.BlockSpec(Wp.shape, lambda i: (0, 0),
                                             pipeline_mode=pl.Buffered(1)))
                in_specs.append(pl.BlockSpec(bp.shape, lambda i: (0, 0),
                                             pipeline_mode=pl.Buffered(1)))
            yp = pl.pallas_call(
                kernel,
                out_shape=out_shape,
                grid=(nb,),
                in_specs=in_specs,
                out_specs=pl.BlockSpec((batch_block, out_p), lambda i: (i, 0)),
                compiler_params=pltpu.CompilerParams(
                    dimension_semantics=("parallel",),
                    vmem_limit_bytes=_vmem_limit(batch_block, 2, 2)),
            )(xp, *flat_w)
        else:
            # Small-shape path: whole arrays resident in VMEM, single
            # invocation, no grid / pipeline bookkeeping.
            yp = pl.pallas_call(
                kernel,
                out_shape=out_shape,
                compiler_params=pltpu.CompilerParams(
                    vmem_limit_bytes=_vmem_limit(b_pad, 1, 1)),
            )(xp, *flat_w)

        # Slice away batch + lane padding outside the kernel (lane-dense store
        # inside, cheap XLA slice here).
        return yp[:B, :out_f]

    return forward


def init_mlp_params(key: jax.Array, widths):
    """torch.nn.Linear default init: U(-1/sqrt(fan_in), 1/sqrt(fan_in)).
    W stored as (in, out) (transposed vs. torch), b as (out,)."""
    params = []
    for w_in, w_out in zip(widths[:-1], widths[1:]):
        key, kw, kb = jax.random.split(key, 3)
        bound = 1.0 / float(w_in) ** 0.5
        W = jax.random.uniform(kw, (w_in, w_out), jnp.float32, -bound, bound)
        b = jax.random.uniform(kb, (w_out,), jnp.float32, -bound, bound)
        params.append((W, b))
    return params


def mlp_reference(x: jax.Array, params) -> jax.Array:
    """Pure-JAX f32 reference matching the PyTorch MLP forward."""
    y = x
    n = len(params)
    for i, (W, b) in enumerate(params):
        y = y @ W + b
        if i < n - 1:
            y = jnp.maximum(y, 0.0)
    return y


def mlp_reference_bf16(x: jax.Array, params) -> jax.Array:
    """Reference that mirrors the kernel's bf16-MXU / f32-accumulate scheme."""
    h = x
    n = len(params)
    y = h
    for i, (W, b) in enumerate(params):
        y = jnp.dot(h.astype(jnp.bfloat16), W.astype(jnp.bfloat16),
                    preferred_element_type=jnp.float32) + b.astype(jnp.float32)
        if i < n - 1:
            y = jnp.maximum(y, 0.0)
        h = y
    return y


if __name__ == "__main__":
    widths = (32, 64, 64, 16)

    key = jax.random.PRNGKey(0)
    key, kx = jax.random.split(key)
    params = init_mlp_params(key, widths)
    forward = make_mlp_forward(params, widths[0], batch_block=256)

    # Small batch -> grid-less whole-array VMEM path.
    x_small = jax.random.normal(kx, (8, widths[0]), jnp.float32)
    out_small = jax.block_until_ready(forward(x_small))
    assert out_small.shape == (8, widths[-1])
    assert jnp.allclose(out_small, mlp_reference_bf16(x_small, params),
                        atol=1e-4, rtol=1e-4), "mismatch vs bf16 reference"
    assert jnp.allclose(out_small, mlp_reference(x_small, params),
                        atol=5e-2, rtol=5e-2), "mismatch vs f32 reference"

    # Larger batch -> batch-tiled, pipelined, 'parallel' path (2 tiles of 256).
    key, kx2 = jax.random.split(key)
    x_big = jax.random.normal(kx2, (512, widths[0]), jnp.float32)
    out_big = jax.block_until_ready(forward(x_big))
    assert out_big.shape == (512, widths[-1])
    assert jnp.allclose(out_big, mlp_reference_bf16(x_big, params),
                        atol=1e-4, rtol=1e-4), "mismatch vs bf16 reference (tiled)"
    assert jnp.allclose(out_big, mlp_reference(x_big, params),
                        atol=5e-2, rtol=5e-2), "mismatch vs f32 reference (tiled)"

    print("KERNEL_OK")
</pallas_src>

<mosaic_0001>
module attributes {stable_mosaic.version = 11 : i64} {
  func.func @_mlp_fused_kernel(%arg0: memref<8x128xbf16, #tpu.memory_space<vmem>>, %arg1: memref<128x128xbf16, #tpu.memory_space<vmem>>, %arg2: memref<1x128xf32, #tpu.memory_space<vmem>>, %arg3: memref<128x128xbf16, #tpu.memory_space<vmem>>, %arg4: memref<1x128xf32, #tpu.memory_space<vmem>>, %arg5: memref<128x128xbf16, #tpu.memory_space<vmem>>, %arg6: memref<1x128xf32, #tpu.memory_space<vmem>>, %arg7: memref<8x128xf32, #tpu.memory_space<vmem>>) attributes {dimension_semantics = [], scalar_prefetch = 0 : i64, scratch_operands = 0 : i64, tpu.core_type = #tpu.core_type<tc>} {
    %c0 = arith.constant 0 : index
    %c0_0 = arith.constant 0 : index
    %0 = vector.load %arg0[%c0, %c0_0] : memref<8x128xbf16, #tpu.memory_space<vmem>>, vector<8x128xbf16>
    %c0_1 = arith.constant 0 : index
    %c0_2 = arith.constant 0 : index
    %1 = vector.load %arg1[%c0_1, %c0_2] : memref<128x128xbf16, #tpu.memory_space<vmem>>, vector<128x128xbf16>
    %c0_3 = arith.constant 0 : index
    %c0_4 = arith.constant 0 : index
    %2 = vector.load %arg2[%c0_3, %c0_4] : memref<1x128xf32, #tpu.memory_space<vmem>>, vector<1x128xf32>
    %cst = arith.constant dense<0.000000e+00> : vector<8x128xf32>
    %3 = tpu.matmul %0, %1, %cst {dimension_numbers = #tpu.dot_dimension_numbers<[1], [0], [0], [1], [0, 0, 1, 1], [], []>} : vector<8x128xbf16>, vector<128x128xbf16>, vector<8x128xf32> -> vector<8x128xf32>
    %4 = vector.broadcast %2 : vector<1x128xf32> to vector<8x128xf32>
    %5 = arith.addf %3, %4 : vector<8x128xf32>
    %cst_5 = arith.constant 0.000000e+00 : f32
    %6 = vector.broadcast %cst_5 : f32 to vector<8x128xf32>
    %7 = arith.maximumf %5, %6 : vector<8x128xf32>
    %c0_6 = arith.constant 0 : index
    %c0_7 = arith.constant 0 : index
    %8 = vector.load %arg3[%c0_6, %c0_7] : memref<128x128xbf16, #tpu.memory_space<vmem>>, vector<128x128xbf16>
    %c0_8 = arith.constant 0 : index
    %c0_9 = arith.constant 0 : index
    %9 = vector.load %arg4[%c0_8, %c0_9] : memref<1x128xf32, #tpu.memory_space<vmem>>, vector<1x128xf32>
    %10 = arith.truncf %7 : vector<8x128xf32> to vector<8x128xbf16>
    %cst_10 = arith.constant dense<0.000000e+00> : vector<8x128xf32>
    %11 = tpu.matmul %10, %8, %cst_10 {dimension_numbers = #tpu.dot_dimension_numbers<[1], [0], [0], [1], [0, 0, 1, 1], [], []>} : vector<8x128xbf16>, vector<128x128xbf16>, vector<8x128xf32> -> vector<8x128xf32>
    %12 = vector.broadcast %9 : vector<1x128xf32> to vector<8x128xf32>
    %13 = arith.addf %11, %12 : vector<8x128xf32>
    %cst_11 = arith.constant 0.000000e+00 : f32
    %14 = vector.broadcast %cst_11 : f32 to vector<8x128xf32>
    %15 = arith.maximumf %13, %14 : vector<8x128xf32>
    %c0_12 = arith.constant 0 : index
    %c0_13 = arith.constant 0 : index
    %16 = vector.load %arg5[%c0_12, %c0_13] : memref<128x128xbf16, #tpu.memory_space<vmem>>, vector<128x128xbf16>
    %c0_14 = arith.constant 0 : index
    %c0_15 = arith.constant 0 : index
    %17 = vector.load %arg6[%c0_14, %c0_15] : memref<1x128xf32, #tpu.memory_space<vmem>>, vector<1x128xf32>
    %18 = arith.truncf %15 : vector<8x128xf32> to vector<8x128xbf16>
    %cst_16 = arith.constant dense<0.000000e+00> : vector<8x128xf32>
    %19 = tpu.matmul %18, %16, %cst_16 {dimension_numbers = #tpu.dot_dimension_numbers<[1], [0], [0], [1], [0, 0, 1, 1], [], []>} : vector<8x128xbf16>, vector<128x128xbf16>, vector<8x128xf32> -> vector<8x128xf32>
    %20 = vector.broadcast %17 : vector<1x128xf32> to vector<8x128xf32>
    %21 = arith.addf %19, %20 : vector<8x128xf32>
    %c0_17 = arith.constant 0 : index
    %c0_18 = arith.constant 0 : index
    %22 = vector.load %arg7[%c0_17, %c0_18] : memref<8x128xf32, #tpu.memory_space<vmem>>, vector<8x128xf32>
    tpu.vector_store %arg7[%c0_17, %c0_18], %21 {strides = array<i32>} : memref<8x128xf32, #tpu.memory_space<vmem>>, vector<8x128xf32>,
    return
  }
}

</mosaic_0001>

<bundles_post_ra>
// kernel: forward.1
= control target key start
LH: loop header
LB: loop body
LE: loop exit
PB: predicated region body
PF: predicated region fallthrough
CT: control target
= control target key end

     0   :  { %12 = vsyncpa [#allocation3], 0  ;;  %s642_s0 = inlined_call_operand.vmem [shape: bf16[8,128], index: 0, kind: input, shape index: {}]   ;;  %s643_s1 = inlined_call_operand.hbm [shape: bf16[128,128], index: 1, kind: input, shape index: {}]   ;;  %s644_s2 = inlined_call_operand.vmem [shape: f32[1,128], index: 2, kind: input, shape index: {}]   ;;  %s645_s3 = inlined_call_operand.hbm [shape: bf16[128,128], index: 3, kind: input, shape index: {}]   ;;  %s646_s4 = inlined_call_operand.vmem [shape: f32[1,128], index: 4, kind: input, shape index: {}]   ;;  %s647_s5 = inlined_call_operand.hbm [shape: bf16[128,128], index: 5, kind: input, shape index: {}]   ;;  %s648_s6 = inlined_call_operand.vmem [shape: f32[1,128], index: 6, kind: input, shape index: {}]   ;;  %s649_s7 = inlined_call_operand.hbm [shape: f32[8,128], index: 7, kind: output, shape index: {}]  }
   0x1   :  { %13 = vsyncpa [#allocation6], 0 }
   0x2   :  { %14 = vsyncpa [#allocation4], 0  ;;  %s36_s26 = sshll.u32 %s645_s3, 4  ;;  %s572_s27 = smov [#allocation5]   ;;  %s37_s26 = int_to_ptr.hbm [resolvable:$true] %s36_s26 }
   0x3   :  { %s38_s28 = sshll.u32 %s572_s27, 4  ;;  %s21_s8 = sshll.u32 %s643_s1, 4  ;;  %s39_s28 = int_to_ptr.vmem [resolvable:$true] %s38_s28  ;;  %s22_s8 = int_to_ptr.hbm [resolvable:$true] %s21_s8 }
   0x4   :  { %s573_s9 = smov 64   ;;  %s574_s10 = smov 4  }
   0x5   :  { %44 = dma.hbm_to_vmem [thread:$0]  %s37_s26, 1024, %s39_s28, [#allocation6], %s573_s9, %s573_s9, %s574_s10  }
   0x6   :  { %s575_s11 = smov [#allocation2]   ;;  %s51_s15 = sshll.u32 %s647_s5, 4  ;;  %s52_s15 = int_to_ptr.hbm [resolvable:$true] %s51_s15 }
   0x7   :  { %s23_s12 = sshll.u32 %s575_s11, 4  ;;  %s576_s3 = smov [#allocation7]   ;;  %s24_s12 = int_to_ptr.vmem [resolvable:$true] %s23_s12 }
   0x8   :  { %29 = dma.hbm_to_vmem [thread:$0]  %s22_s8, 1024, %s24_s12, [#allocation3], %s573_s9, %s573_s9, %s574_s10  }
   0x9   :  { %s53_s16 = sshll.u32 %s576_s3, 4  ;;  %s54_s16 = int_to_ptr.vmem [resolvable:$true] %s53_s16 }
   0xa   :  { %59 = dma.hbm_to_vmem [thread:$0]  %s52_s15, 1024, %s54_s16, [#allocation6], %s573_s9, %s573_s9, %s574_s10  }
   0xb   :  { %566 = dma.done.wait [#allocation3], 1024  }
   0xc   :  { %567 = vsyncadd [#allocation3], 4294966272 }
   0xd   :  { %568 = dma.done.wait [#allocation6], 2048  }
   0xe   :  { %569 = vsyncadd [#allocation6], 4294965248  ;;  %v444_v0 = vld [vmem:[#allocation2 + $0x38] sm:$0xff]  ;;  %v443_v1 = vld [vmem:[#allocation2 + $0x30] sm:$0xff]  ;;  %s577_s21 = smov [#allocation8]   ;;  %s330_s25 = sshll.u32 %s649_s7, 4  ;;  %s331_s25 = int_to_ptr.hbm [resolvable:$true] %s330_s25 }
   0xf   :  { %143 = vmatpush.bf16.msra.mxu0 %v444_v0  ;;  %v452_v2 = vld [vmem:[#allocation5 + $0x38] sm:$0xff]  ;;  %v451_v3 = vld [vmem:[#allocation5 + $0x30] sm:$0xff]  ;;  %v442_v4 = vld [vmem:[#allocation2 + $0x28] sm:$0xff]  ;;  %s328_s22 = sshll.u32 %s577_s21, 4  ;;  %s329_s22 = int_to_ptr.vmem [resolvable:$true] %s328_s22 }
  0x10   :  { %226 = vmatpush.bf16.msra.mxu1 %v452_v2  ;;  %v450_v5 = vld [vmem:[#allocation5 + $0x28] sm:$0xff]  ;;  %v441_v6 = vld [vmem:[#allocation2 + $0x20] sm:$0xff]  ;;  %v440_v8 = vld [vmem:[#allocation2 + $0x18] sm:$0xff] }
  0x11   :  { %v449_v7 = vld [vmem:[#allocation5 + $0x20] sm:$0xff]  ;;  %v448_v9 = vld [vmem:[#allocation5 + $0x18] sm:$0xff]  ;;  %v439_v10 = vld [vmem:[#allocation2 + $0x10] sm:$0xff] }
  0x12   :  { %v447_v11 = vld [vmem:[#allocation5 + $0x10] sm:$0xff]  ;;  %v438_v12 = vld [vmem:[#allocation2 + $0x8] sm:$0xff]  ;;  %v437_v13 = vld [vmem:[#allocation2] sm:$0xff] }
  0x13   :  { %144 = vmatpush.bf16.msra.mxu0 %v443_v1  ;;  %v74_v14 = vld [vmem:[%s642_s0] sm:$0xf]  ;;  %v446_v15 = vld [vmem:[#allocation5 + $0x8] sm:$0xff]  ;;  %v460_v17 = vld [vmem:[#allocation7 + $0x38] sm:$0xff] }
  0x14   :  { %227 = vmatpush.bf16.msra.mxu1 %v451_v3  ;;  %v445_v16 = vld [vmem:[#allocation5] sm:$0xff]  ;;  %309 = vmatpush.bf16.msra.mxu2 %v460_v17  ;;  %v459_v18 = vld [vmem:[#allocation7 + $0x30] sm:$0xff]  ;;  %v458_v19 = vld [vmem:[#allocation7 + $0x28] sm:$0xff] }
  0x15   :  { %v457_v20 = vld [vmem:[#allocation7 + $0x20] sm:$0xff]  ;;  %v456_v21 = vld [vmem:[#allocation7 + $0x18] sm:$0xff]  ;;  %v455_v22 = vld [vmem:[#allocation7 + $0x10] sm:$0xff] }
  0x16   :  { %v467_v23 = vld [vmem:[%s644_s2] ss:$0 sm:$0xff]  ;;  %v454_v29 = vld [vmem:[#allocation7 + $0x8] sm:$0xff] }
  0x17   :  { %145 = vmatpush.bf16.msra.mxu0 %v442_v4  ;;  %v453_v30 = vld [vmem:[#allocation7] sm:$0xff] }
  0x18   :  { %228 = vmatpush.bf16.msra.mxu1 %v450_v5  ;;  %310 = vmatpush.bf16.msra.mxu2 %v459_v18  ;;  %v468_v31 = vld [vmem:[%s646_s4] ss:$0 sm:$0xff] }
  0x19   :  { %v469_v37 = vld [vmem:[%s648_s6] ss:$0 sm:$0xff] }
  0x1b   :  { %146 = vmatpush.bf16.msra.mxu0 %v441_v6 }
  0x1c   :  { %229 = vmatpush.bf16.msra.mxu1 %v449_v7  ;;  %311 = vmatpush.bf16.msra.mxu2 %v458_v19 }
  0x1f   :  { %147 = vmatpush.bf16.msra.mxu0 %v440_v8 }
  0x20   :  { %230 = vmatpush.bf16.msra.mxu1 %v448_v9  ;;  %312 = vmatpush.bf16.msra.mxu2 %v457_v20 }
  0x23   :  { %148 = vmatpush.bf16.msra.mxu0 %v439_v10 }
  0x24   :  { %231 = vmatpush.bf16.msra.mxu1 %v447_v11  ;;  %313 = vmatpush.bf16.msra.mxu2 %v456_v21 }
  0x27   :  { %149 = vmatpush.bf16.msra.mxu0 %v438_v12 }
  0x28   :  { %232 = vmatpush.bf16.msra.mxu1 %v446_v15  ;;  %314 = vmatpush.bf16.msra.mxu2 %v455_v22 }
  0x2b   :  { %150 = vmatpush.bf16.msra.mxu0 %v437_v13 }
  0x2c   :  { %233 = vmatpush.bf16.msra.mxu1 %v445_v16  ;;  %315 = vmatpush.bf16.msra.mxu2 %v454_v29 }
  0x2e   :  { %151 = vmatmul.bf16.vlgmr.msra.gmra.mxu0 %v74_v14 }
  0x30   :  { %316 = vmatpush.bf16.msra.mxu2 %v453_v30 }
  0xab   :  { %v152_v24 = vpop.f32.mrf.mxu0 }
  0xac   :  { %v153_v25 = vadd.f32 %v467_v23, %v152_v24 }
  0xae   :  { %v156_v26 = vmax.f32 %v153_v25, 0.0 }
  0xb0   :  { %v174_v27 = vpack.c.bf16 %v156_v26, %v156_v26 }
  0xb2   :  { %234 = vmatmul.bf16.vlgmr.msra.gmra.mxu1 %v174_v27 }
  0xb3   :  { %v154_v28 = vpop.f32.mrf.mxu0 }
 0x12f   :  { %v235_v32 = vpop.f32.mrf.mxu1 }
 0x130   :  { %v236_v33 = vadd.f32 %v468_v31, %v235_v32 }
 0x132   :  { %v239_v34 = vmax.f32 %v236_v33, 0.0 }
 0x134   :  { %v257_v35 = vpack.c.bf16 %v239_v34, %v239_v34 }
 0x136   :  { %317 = vmatmul.bf16.vlgmr.msra.gmra.mxu2 %v257_v35 }
 0x137   :  { %v237_v36 = vpop.f32.mrf.mxu1 }
 0x1b9   :  { %v318_v38 = vpop.f32.mrf.mxu2 }
 0x1ba   :  { %v319_v39 = vadd.f32 %v469_v37, %v318_v38 }
 0x1bc   :  { %322 = vst [vmem:[#allocation8] sm:$0xff] %v319_v39 }
 0x1bd   :  { %333 = dma.vmem_to_hbm [thread:$0]  %s329_s22, 128, %s331_s25, [#allocation4]  }
 0x1c1   :  { %v320_v40 = vpop.f32.mrf.mxu2 }
 0x1c2   :  { %570 = dma.done.wait [#allocation4], 128  }
 0x1c3   :  { %571 = vsyncadd [#allocation4], 4294967168 }
 0x1c4   :  { %338 = vsyncpa [#allocation3], 1 }
 0x1c5   :  { %339 = vsyncpa [#allocation6], 1 }
 0x1c6   :  { %340 = vsyncpa [#allocation4], 1 }

</bundles_post_ra>
